<compile_context>
chip_gen: v6e
topology: v6e:2x2x1
jax: 0.10.0
libtpu: 0.0.40
codegen_flags: <defaults>
</compile_context>

<pallas_src>
import functools

import jax
import jax.numpy as jnp
import numpy as np
from jax import lax
from jax.experimental import pallas as pl
from jax.experimental.pallas import tpu as pltpu


def _soft_dice_kernel(x_ref, y_ref, chan_ref, sxy_ref, ssum_ref, *,
                      labels_mode, tile_s, acc_w, tiles_per_part, n_parts,
                      has_tail, tail_len):
    """Accumulate sum(x*y) and sum(x)+sum(y) per (batch, channel) row.

    Kernel-visible shapes:
      x_ref    : (C, tile_s)   network-output tile (network dtype)
      y_ref    : (1, tile_s)   int label-map tile            (labels_mode)
                 (C, tile_s)   float gt tile                 (otherwise)
      chan_ref : (C, 1) int32  channel ids
      sxy_ref  : (C, acc_w) f32  resident accumulator of sum(x*y)
      ssum_ref : (C, acc_w) f32  resident accumulator of sum(x)+sum(y)
    """
    p = pl.program_id(0)
    s = pl.program_id(2)

    @pl.when(s == 0)
    def _init():
        sxy_ref[...] = jnp.zeros_like(sxy_ref)
        ssum_ref[...] = jnp.zeros_like(ssum_ref)

    x = x_ref[...].astype(jnp.float32)                       # (C, tile_s)

    def _fold(v):
        # (C, tile_s) -> (C, acc_w): lane-aligned slices + VALU adds only.
        if acc_w == tile_s:
            return v
        out = v[:, :acc_w]
        for i in range(1, tile_s // acc_w):
            out = out + v[:, i * acc_w:(i + 1) * acc_w]
        return out

    def _accumulate(masked):
        xv = x
        if labels_mode:
            lab = y_ref[...].astype(jnp.int32)                # (1, tile_s)
            eq = lab == chan_ref[...]                         # (C, tile_s) bool
            if masked:
                col = lax.broadcasted_iota(jnp.int32, eq.shape, 1)
                valid = col < tail_len
                eq = jnp.logical_and(eq, valid)
                xv = jnp.where(valid, xv, 0.0)
            yf = eq.astype(jnp.float32)
            xy = jnp.where(eq, xv, 0.0)                       # x * one_hot (no cast+mul)
        else:
            yf = y_ref[...].astype(jnp.float32)               # (C, tile_s)
            if masked:
                col = lax.broadcasted_iota(jnp.int32, xv.shape, 1)
                valid = col < tail_len
                xv = jnp.where(valid, xv, 0.0)
                yf = jnp.where(valid, yf, 0.0)
            xy = xv * yf
        # Algebraic identity: 2*tp + fp + fn == sum(x) + sum(y) (holds without
        # loss_mask), so only these two lane-spread sums are accumulated.
        sxy_ref[...] += _fold(xy)
        ssum_ref[...] += _fold(xv + yf)

    if has_tail:
        # Only the single last *global* spatial tile is ragged.
        is_tail = jnp.logical_and(p == n_parts - 1, s == tiles_per_part - 1)

        @pl.when(is_tail)
        def _tail():
            _accumulate(True)

        @pl.when(jnp.logical_not(is_tail))
        def _body():
            _accumulate(False)
    else:
        _accumulate(False)


_VMEM_BLOCK_BUDGET = 16 * 1024 * 1024   # conservative block budget; safe v5e/v6e/v7x
_MAX_TILE_S = 8192                      # per-step-overhead knee is well below this


def _pick_tile_s(S, bytes_per_s, max_tile_s):
    cap = max(128, (_VMEM_BLOCK_BUDGET // max(bytes_per_s, 1)) // 128 * 128)
    cap = min(cap, max_tile_s)
    if S <= cap:
        return S
    # Prefer the largest multiple of 128 <= cap that divides S (no ragged tail).
    t = cap
    while t >= 128:
        if S % t == 0:
            return t
        t -= 128
    return cap


def _pick_partitions(batch, n_tiles):
    # v7x has 2 TensorCores; make sure the "parallel" grid axes carry >=2
    # (ideally >=4) blocks even for tiny batch sizes by splitting the spatial
    # axis into independent partitions whose partial sums combine in the wrapper.
    if batch >= 4 or n_tiles < 2:
        return 1
    for cand in (4, 2):
        if n_tiles % cand == 0:
            return cand
    return 1


def soft_dice_loss(x, y, *, smooth=1.0, max_tile_s=_MAX_TILE_S):
    """SoftDiceLoss forward (batch_dice=False, do_bg=True, apply_nonlin=None).

    x: (B, C, *spatial) float network output (consumed in its network dtype).
    y: integer label map (B, 1, *spatial) / (B, *spatial), or a gt tensor with
       the same shape as x (then used directly, as in the PyTorch code).
    Returns a scalar float32 loss.
    """
    B, C = int(x.shape[0]), int(x.shape[1])
    S = int(np.prod(x.shape[2:]))

    # --- reproduce get_tp_fp_fn_tn's gt handling ------------------------------
    if y.ndim != x.ndim:
        y = y.reshape((y.shape[0], 1) + tuple(y.shape[1:]))
    labels_mode = tuple(y.shape) != tuple(x.shape)

    x3 = x.reshape(B, C, S)                     # network dtype kept; cast in-kernel
    x_bytes = x.dtype.itemsize
    if labels_mode:
        lab_dtype = jnp.int8 if C <= 127 else jnp.int32
        y3 = y.reshape(B, 1, S).astype(lab_dtype)   # (B,1,S): NOT broadcast over C
        y_bytes_per_s = 1 if C <= 127 else 4
    else:
        y3 = y.reshape(B, C, S)
        y_bytes_per_s = C * y3.dtype.itemsize

    # Per-channel id column (tiny side input; avoids per-step vector iota).
    chan = jnp.arange(C, dtype=jnp.int32).reshape(C, 1)

    bytes_per_s = 2 * C * x_bytes + 2 * y_bytes_per_s        # double-buffered blocks
    tile_s = _pick_tile_s(S, bytes_per_s, max_tile_s)
    n_tiles = pl.cdiv(S, tile_s)
    has_tail = (S % tile_s) != 0
    tail_len = S - (n_tiles - 1) * tile_s

    n_parts = _pick_partitions(B, n_tiles)
    tiles_per_part = n_tiles // n_parts

    # 128-lane-wide accumulators: negligible vld/vst per step, and lane-spread
    # accumulation keeps f32 rounding error low for very large S.
    acc_w = 128 if tile_s % 128 == 0 else tile_s

    kernel = functools.partial(
        _soft_dice_kernel,
        labels_mode=labels_mode,
        tile_s=tile_s,
        acc_w=acc_w,
        tiles_per_part=tiles_per_part,
        n_parts=n_parts,
        has_tail=has_tail,
        tail_len=tail_len,
    )

    x_spec = pl.BlockSpec(
        (None, C, tile_s), lambda p, b, s: (b, 0, p * tiles_per_part + s))
    if labels_mode:
        # Label block index is constant across the channel dim -> re-read from
        # VMEM, never duplicated in HBM.
        y_spec = pl.BlockSpec(
            (None, 1, tile_s), lambda p, b, s: (b, 0, p * tiles_per_part + s))
    else:
        y_spec = pl.BlockSpec(
            (None, C, tile_s), lambda p, b, s: (b, 0, p * tiles_per_part + s))
    chan_spec = pl.BlockSpec((C, 1), lambda p, b, s: (0, 0))
    out_spec = pl.BlockSpec((None, None, C, acc_w), lambda p, b, s: (p, b, 0, 0))

    sxy_part, ssum_part = pl.pallas_call(
        kernel,
        out_shape=(
            jax.ShapeDtypeStruct((n_parts, B, C, acc_w), jnp.float32),
            jax.ShapeDtypeStruct((n_parts, B, C, acc_w), jnp.float32),
        ),
        grid_spec=pltpu.PrefetchScalarGridSpec(
            num_scalar_prefetch=0,
            grid=(n_parts, B, tiles_per_part),
            in_specs=[x_spec, y_spec, chan_spec],
            out_specs=(out_spec, out_spec),
        ),
        compiler_params=pltpu.CompilerParams(
            dimension_semantics=("parallel", "parallel", "arbitrary"),
            vmem_limit_bytes=32 * 1024 * 1024,
        ),
    )(x3, y3, chan)

    # Combine spatial-partition partials + cross-lane reduce in the tiny wrapper.
    sxy = jnp.sum(sxy_part, axis=(0, 3))         # (B, C)
    ssum = jnp.sum(ssum_part, axis=(0, 3))       # (B, C)
    dc = (2.0 * sxy + smooth) / (ssum + smooth)
    # do_bg=True, batch_dice=False: mean over all (b, c) dice scores, negated.
    return -jnp.mean(dc)


def _reference_soft_dice(x, y, smooth=1.0):
    # Pure-JAX reference mirroring the PyTorch code (batch_dice=False, do_bg=True).
    C = x.shape[1]
    if y.ndim != x.ndim:
        y = y.reshape((y.shape[0], 1) + tuple(y.shape[1:]))
    if tuple(y.shape) == tuple(x.shape):
        y_onehot = y.astype(jnp.float32)
    else:
        labels = y[:, 0].astype(jnp.int32)
        y_onehot = jax.nn.one_hot(labels, C, axis=1, dtype=jnp.float32)
    axes = tuple(range(2, x.ndim))
    xf = x.astype(jnp.float32)
    tp = jnp.sum(xf * y_onehot, axis=axes)
    fp = jnp.sum(xf * (1.0 - y_onehot), axis=axes)
    fn = jnp.sum((1.0 - xf) * y_onehot, axis=axes)
    dc = (2.0 * tp + smooth) / (2.0 * tp + fp + fn + smooth)
    return -jnp.mean(dc)


if __name__ == "__main__":
    key = jax.random.PRNGKey(0)
    kx, ky, kg = jax.random.split(key, 3)

    # Main case: (B, C, H, W) = (2, 4, 16, 16), integer label map (B, 1, H, W).
    B, C, H, W = 2, 4, 16, 16
    logits = jax.random.normal(kx, (B, C, H, W), dtype=jnp.float32)
    x = jax.nn.softmax(logits, axis=1)           # apply_nonlin=None: loss eats x as-is
    y = jax.random.randint(ky, (B, 1, H, W), 0, C, dtype=jnp.int32)

    loss = jax.block_until_ready(soft_dice_loss(x, y, smooth=1.0))
    ref = _reference_soft_dice(x, y, smooth=1.0)
    np.testing.assert_allclose(np.asarray(loss), np.asarray(ref),
                               rtol=1e-5, atol=1e-6)

    # Multi-tile + spatial-partition path (small tile cap to force it).
    loss2 = jax.block_until_ready(soft_dice_loss(x, y, smooth=1.0, max_tile_s=128))
    np.testing.assert_allclose(np.asarray(loss2), np.asarray(ref),
                               rtol=1e-5, atol=1e-6)

    # Ragged-tail path: S = 10*23 = 230 is not a multiple of the 128-lane tile.
    Hb, Wb = 10, 23
    logits_b = jax.random.normal(kg, (B, C, Hb, Wb), dtype=jnp.float32)
    xb = jax.nn.softmax(logits_b, axis=1)
    yb = jax.random.randint(ky, (B, 1, Hb, Wb), 0, C, dtype=jnp.int32)
    loss3 = jax.block_until_ready(soft_dice_loss(xb, yb, smooth=1.0, max_tile_s=128))
    ref3 = _reference_soft_dice(xb, yb, smooth=1.0)
    np.testing.assert_allclose(np.asarray(loss3), np.asarray(ref3),
                               rtol=1e-5, atol=1e-6)

    print("KERNEL_OK")
</pallas_src>

<mosaic_0001>
module attributes {stable_mosaic.version = 11 : i64} {
  func.func @_soft_dice_kernel(%arg0: i32, %arg1: i32, %arg2: i32, %arg3: memref<1x4x256xf32, #tpu.memory_space<vmem>>, %arg4: memref<1x1x256xi8, #tpu.memory_space<vmem>>, %arg5: memref<4x1xi32, #tpu.memory_space<vmem>>, %arg6: memref<1x1x4x128xf32, #tpu.memory_space<vmem>>, %arg7: memref<1x1x4x128xf32, #tpu.memory_space<vmem>>) attributes {dimension_semantics = [#tpu.dimension_semantics<parallel>, #tpu.dimension_semantics<parallel>, #tpu.dimension_semantics<arbitrary>], iteration_bounds = array<i64: 1, 2, 1>, scalar_prefetch = 0 : i64, scratch_operands = 0 : i64, tpu.core_type = #tpu.core_type<tc>, window_params = [{transform_indices = @transform_0, window_bounds = array<i64: 1, 4, 256>}, {transform_indices = @transform_1, window_bounds = array<i64: 1, 1, 256>}, {pipeline_mode = #tpu.pipeline_mode<synchronous>, transform_indices = @transform_2, window_bounds = array<i64: 4, 1>}, {transform_indices = @transform_3, window_bounds = array<i64: 1, 1, 4, 128>}, {transform_indices = @transform_4, window_bounds = array<i64: 1, 1, 4, 128>}]} {
    %c0_i32 = arith.constant 0 : i32
    %0 = arith.cmpi eq, %arg2, %c0_i32 : i32
    %1 = arith.extui %0 : i1 to i32
    %c0_i32_0 = arith.constant 0 : i32
    %2 = arith.cmpi ne, %1, %c0_i32_0 : i32
    scf.if %2 {
      %cst_24 = arith.constant 0.000000e+00 : f32
      %35 = vector.broadcast %cst_24 : f32 to vector<4x128xf32>
      %c0_25 = arith.constant 0 : index
      %c0_26 = arith.constant 0 : index
      %c0_27 = arith.constant 0 : index
      %c0_28 = arith.constant 0 : index
      %36 = vector.load %arg6[%c0_25, %c0_26, %c0_27, %c0_28] : memref<1x1x4x128xf32, #tpu.memory_space<vmem>>, vector<1x1x4x128xf32>
      %37 = vector.shape_cast %36 : vector<1x1x4x128xf32> to vector<4x128xf32>
      %38 = vector.shape_cast %35 : vector<4x128xf32> to vector<1x1x4x128xf32>
      tpu.vector_store %arg6[%c0_25, %c0_26, %c0_27, %c0_28], %38 {strides = array<i32>} : memref<1x1x4x128xf32, #tpu.memory_space<vmem>>, vector<1x1x4x128xf32>,
      %cst_29 = arith.constant 0.000000e+00 : f32
      %39 = vector.broadcast %cst_29 : f32 to vector<4x128xf32>
      %c0_30 = arith.constant 0 : index
      %c0_31 = arith.constant 0 : index
      %c0_32 = arith.constant 0 : index
      %c0_33 = arith.constant 0 : index
      %40 = vector.load %arg7[%c0_30, %c0_31, %c0_32, %c0_33] : memref<1x1x4x128xf32, #tpu.memory_space<vmem>>, vector<1x1x4x128xf32>
      %41 = vector.shape_cast %40 : vector<1x1x4x128xf32> to vector<4x128xf32>
      %42 = vector.shape_cast %39 : vector<4x128xf32> to vector<1x1x4x128xf32>
      tpu.vector_store %arg7[%c0_30, %c0_31, %c0_32, %c0_33], %42 {strides = array<i32>} : memref<1x1x4x128xf32, #tpu.memory_space<vmem>>, vector<1x1x4x128xf32>,
    } else {
    }
    %c0 = arith.constant 0 : index
    %c0_1 = arith.constant 0 : index
    %c0_2 = arith.constant 0 : index
    %3 = vector.load %arg3[%c0, %c0_1, %c0_2] : memref<1x4x256xf32, #tpu.memory_space<vmem>>, vector<1x4x256xf32>
    %4 = vector.shape_cast %3 : vector<1x4x256xf32> to vector<4x256xf32>
    %c0_3 = arith.constant 0 : index
    %c0_4 = arith.constant 0 : index
    %c0_5 = arith.constant 0 : index
    %5 = vector.load %arg4[%c0_3, %c0_4, %c0_5] : memref<1x1x256xi8, #tpu.memory_space<vmem>>, vector<1x1x256xi8>
    %6 = vector.shape_cast %5 : vector<1x1x256xi8> to vector<1x256xi8>
    %7 = arith.extsi %6 : vector<1x256xi8> to vector<1x256xi32>
    %c0_6 = arith.constant 0 : index
    %c0_7 = arith.constant 0 : index
    %8 = vector.load %arg5[%c0_6, %c0_7] : memref<4x1xi32, #tpu.memory_space<vmem>>, vector<4x1xi32>
    %9 = vector.broadcast %7 : vector<1x256xi32> to vector<4x256xi32>
    %10 = vector.broadcast %8 : vector<4x1xi32> to vector<4x256xi32>
    %11 = arith.cmpi eq, %9, %10 : vector<4x256xi32>
    %12 = arith.extui %11 : vector<4x256xi1> to vector<4x256xi32>
    %13 = arith.sitofp %12 : vector<4x256xi32> to vector<4x256xf32>
    %cst = arith.constant 0.000000e+00 : f32
    %14 = vector.broadcast %cst : f32 to vector<4x256xf32>
    %15 = arith.select %11, %4, %14 : vector<4x256xi1>, vector<4x256xf32>
    %c0_8 = arith.constant 0 : index
    %c0_9 = arith.constant 0 : index
    %c0_10 = arith.constant 0 : index
    %c0_11 = arith.constant 0 : index
    %16 = vector.load %arg6[%c0_8, %c0_9, %c0_10, %c0_11] : memref<1x1x4x128xf32, #tpu.memory_space<vmem>>, vector<1x1x4x128xf32>
    %17 = vector.shape_cast %16 : vector<1x1x4x128xf32> to vector<4x128xf32>
    %18 = vector.extract_strided_slice %15 {offsets = [0, 0], sizes = [4, 128], strides = [1, 1]} : vector<4x256xf32> to vector<4x128xf32>
    %19 = vector.extract_strided_slice %15 {offsets = [0, 128], sizes = [4, 128], strides = [1, 1]} : vector<4x256xf32> to vector<4x128xf32>
    %20 = arith.addf %18, %19 : vector<4x128xf32>
    %21 = arith.addf %17, %20 : vector<4x128xf32>
    %c0_12 = arith.constant 0 : index
    %c0_13 = arith.constant 0 : index
    %c0_14 = arith.constant 0 : index
    %c0_15 = arith.constant 0 : index
    %22 = vector.load %arg6[%c0_12, %c0_13, %c0_14, %c0_15] : memref<1x1x4x128xf32, #tpu.memory_space<vmem>>, vector<1x1x4x128xf32>
    %23 = vector.shape_cast %22 : vector<1x1x4x128xf32> to vector<4x128xf32>
    %24 = vector.shape_cast %21 : vector<4x128xf32> to vector<1x1x4x128xf32>
    tpu.vector_store %arg6[%c0_12, %c0_13, %c0_14, %c0_15], %24 {strides = array<i32>} : memref<1x1x4x128xf32, #tpu.memory_space<vmem>>, vector<1x1x4x128xf32>,
    %c0_16 = arith.constant 0 : index
    %c0_17 = arith.constant 0 : index
    %c0_18 = arith.constant 0 : index
    %c0_19 = arith.constant 0 : index
    %25 = vector.load %arg7[%c0_16, %c0_17, %c0_18, %c0_19] : memref<1x1x4x128xf32, #tpu.memory_space<vmem>>, vector<1x1x4x128xf32>
    %26 = vector.shape_cast %25 : vector<1x1x4x128xf32> to vector<4x128xf32>
    %27 = arith.addf %4, %13 : vector<4x256xf32>
    %28 = vector.extract_strided_slice %27 {offsets = [0, 0], sizes = [4, 128], strides = [1, 1]} : vector<4x256xf32> to vector<4x128xf32>
    %29 = vector.extract_strided_slice %27 {offsets = [0, 128], sizes = [4, 128], strides = [1, 1]} : vector<4x256xf32> to vector<4x128xf32>
    %30 = arith.addf %28, %29 : vector<4x128xf32>
    %31 = arith.addf %26, %30 : vector<4x128xf32>
    %c0_20 = arith.constant 0 : index
    %c0_21 = arith.constant 0 : index
    %c0_22 = arith.constant 0 : index
    %c0_23 = arith.constant 0 : index
    %32 = vector.load %arg7[%c0_20, %c0_21, %c0_22, %c0_23] : memref<1x1x4x128xf32, #tpu.memory_space<vmem>>, vector<1x1x4x128xf32>
    %33 = vector.shape_cast %32 : vector<1x1x4x128xf32> to vector<4x128xf32>
    %34 = vector.shape_cast %31 : vector<4x128xf32> to vector<1x1x4x128xf32>
    tpu.vector_store %arg7[%c0_20, %c0_21, %c0_22, %c0_23], %34 {strides = array<i32>} : memref<1x1x4x128xf32, #tpu.memory_space<vmem>>, vector<1x1x4x128xf32>,
    return
  }
  func.func @transform_0(%arg0: i32, %arg1: i32, %arg2: i32) -> (i32, i32, i32) {
    %c1_i32 = arith.constant 1 : i32
    %0 = arith.muli %arg0, %c1_i32 : i32
    %1 = arith.addi %0, %arg2 : i32
    %c0_i32 = arith.constant 0 : i32
    %c0_i32_0 = arith.constant 0 : i32
    return %arg1, %c0_i32, %1 : i32, i32, i32
  }
  func.func @transform_1(%arg0: i32, %arg1: i32, %arg2: i32) -> (i32, i32, i32) {
    %c1_i32 = arith.constant 1 : i32
    %0 = arith.muli %arg0, %c1_i32 : i32
    %1 = arith.addi %0, %arg2 : i32
    %c0_i32 = arith.constant 0 : i32
    %c0_i32_0 = arith.constant 0 : i32
    return %arg1, %c0_i32, %1 : i32, i32, i32
  }
  func.func @transform_2(%arg0: i32, %arg1: i32, %arg2: i32) -> (i32, i32) {
    %c0_i32 = arith.constant 0 : i32
    %c0_i32_0 = arith.constant 0 : i32
    %c0_i32_1 = arith.constant 0 : i32
    return %c0_i32, %c0_i32_0 : i32, i32
  }
  func.func @transform_3(%arg0: i32, %arg1: i32, %arg2: i32) -> (i32, i32, i32, i32) {
    %c0_i32 = arith.constant 0 : i32
    %c0_i32_0 = arith.constant 0 : i32
    %c0_i32_1 = arith.constant 0 : i32
    return %arg0, %arg1, %c0_i32, %c0_i32_0 : i32, i32, i32, i32
  }
  func.func @transform_4(%arg0: i32, %arg1: i32, %arg2: i32) -> (i32, i32, i32, i32) {
    %c0_i32 = arith.constant 0 : i32
    %c0_i32_0 = arith.constant 0 : i32
    %c0_i32_1 = arith.constant 0 : i32
    return %arg0, %arg1, %c0_i32, %c0_i32_0 : i32, i32, i32, i32
  }
}

</mosaic_0001>

<bundles_post_ra>
// kernel: tpu_custom_call.1
= control target key start
LH: loop header
LB: loop body
LE: loop exit
PB: predicated region body
PF: predicated region fallthrough
CT: control target
= control target key end

     0   :  { %10 = vsyncpa [#allocation3], 0  ;;  %s976_s0 = inlined_call_operand.hbm [shape: f32[2,4,256], index: 0, kind: input, shape index: {}]   ;;  %s977_s1 = inlined_call_operand.vmem [shape: s8[2,1,256], index: 1, kind: input, shape index: {}]   ;;  %s978_s2 = inlined_call_operand.vmem [shape: s32[4,1], index: 2, kind: input, shape index: {}]   ;;  %s979_s3 = inlined_call_operand.hbm [shape: f32[1,2,4,128], index: 3, kind: output, shape index: {0}]   ;;  %s980_s4 = inlined_call_operand.hbm [shape: f32[1,2,4,128], index: 4, kind: output, shape index: {1}]  }
   0x1   :  { %12 = vsyncpa [#allocation3 + $0x1], 0 }
   0x2   :  { %13 = vsyncpa [#allocation4], 0 }
   0x3   :  { %15 = vsyncpa [#allocation4 + $0x1], 0 }
   0x4   :  { %16 = vsyncpa [#allocation7], 0 }
   0x5   :  { %18 = vsyncpa [#allocation7 + $0x1], 0  ;;  %s787_s15 = smov 0   ;;  %s789_s16 = smov 0  }
   0x6   :  { %s791_s17 = smov 0   ;;  %s793_s18 = smov 0  }
   0x7   :  { %s795_s19 = smov 0   ;;  %s797_s20 = smov 0  }
   0x8 LB: > { %s525_s21 = sadd.s32 4294967295, %s755_s20   ;;  %s526_s22 = sadd.s32 4294967294, %s755_s20   ;;  %s755_s20 = sphi %s797_s20, %s24_s20   ;;  %s751_s19 = sphi %s795_s19, %s992_s19   ;;  %s747_s18 = sphi %s793_s18, %s991_s18   ;;  %s743_s17 = sphi %s791_s17, %s990_s17   ;;  %s739_s16 = sphi %s789_s16, %s989_s16   ;;  %s735_s15 = sphi %s787_s15, %s988_s15  }
   0x9   : > { %s39_s23 = sadd.s32 1, %s751_s19  ;;  %s54_s24 = sadd.s32 1, %s743_s17 }
   0xa   : > { %p41_p0 = scmp.ge.s32.totalorder %s39_s23, 2  ;;  %p61_p1 = scmp.ne.s32.totalorder %s743_s17, %s739_s16 }
   0xb   : > { %p62_p2 = scmp.eq.s32.totalorder %s755_s20, 0  ;;  %p67_p3 = scmp.ne.s32.totalorder %s739_s16, %s735_s15 }
   0xc   : > { %s994_s23 = smov (%p41_p0, %s39_s23), 0  ;;  %p68_p5 = scmp.eq.s32.totalorder %s525_s21, 0 }
   0xd   : > { %p828_p4 = por %p62_p2, %p61_p1  ;;  %s49_s26 = ssub.s32 %s751_s19, %s994_s23 }
   0xe   : > { %p144_p6 = scmp.eq.s32.totalorder %s525_s21, 1  ;;  %p52_p7 = scmp.eq.s32.totalorder %s49_s26, 0 }
   0xf   : > { %p834_p8 = por %p68_p5, %p67_p3  ;;  %p150_p10 = scmp.eq.s32.totalorder %s526_s22, 1 }
  0x10   : > { %p838_p9 = por %p144_p6, %p61_p1  ;;  %p563_p13 = scmp.lt.s32.totalorder %s755_s20, 2 }
  0x11   : > { %s843_s29 = scalar_select %p52_p7, %s743_s17, %s54_s24  }
  0x12   : > { %p845_p11 = por %p150_p10, %p67_p3  ;;  %s201_s5 = sand.u32 1, %s743_s17  }
  0x13   : > { %s529_s6 = sshll.u32 %s201_s5, 3  ;;  %s545_s7 = sshll.u32 %s751_s19, 7 }
  0x14   : > { %s984_s30 = scalar_select %p845_p11, 1, 0 }
  0x15   : > { %s214_s10 = scalar_lea.hbm %s976_s0, %s545_s7  ;;  %s205_s11 = scalar_lea.vmem [#allocation2], %s529_s6 }
  0x16   : > { %s216_s12 = sshll.u32 %s205_s11, 4  ;;  %p858_p0 = pnand %p563_p13, %p828_p4  ;;  %s217_s12 = int_to_ptr.vmem [resolvable:$true] %s216_s12 }
  0x17   : > { %p532_p1 = scmp.ge.s32.totalorder %s755_s20, 1  ;;  %p235_p2 = scmp.lt.s32.totalorder %s755_s20, 3 }
  0x18   : > { %s202_s14 = scalar_lea.sflag [#allocation3], %s201_s5  ;;  %p619_p3 = pneg %p858_p0 }
  0x19   : > { %s630_s21 = scalar_lea.vmem %s217_s12, 128  ;;  %s757_s22 = smov [#allocation2]  }
  0x1a   : > { %p631_p5 = scmp.ne.s32.totalorder %s217_s12, %s630_s21  ;;  %s635_s24 = sshll.u32 %s757_s22, 4  ;;  %s636_s24 = int_to_ptr.vmem [resolvable:$false] %s635_s24 }
  0x1b   : > { %s637_s26 = scalar_lea.vmem %s636_s24, 256  ;;  %p638_p10 = scmp.lt.s32.totalorder %s217_s12, %s636_s24 }
  0x1c   : > { %p633_p6 = pnand %p631_p5, %p619_p3  ;;  %p639_p12 = scmp.lt.s32.totalorder %s637_s26, %s630_s21 }
  0x1e   : > { %p634_p7 = pneg %p633_p6  ;;  %p640_p4 = por %p639_p12, %p638_p10 }
  0x20   : > { %p641_p13 = pnand %p640_p4, %p634_p7 }
  0x22   : > { %644 = shalt.err (!%p641_p13)
}
  0x23   : > { %555 = dma.hbm_to_vmem [thread:$0]  (!%p858_p0), %s214_s10, 128, %s217_s12, %s202_s14  }
  0x24   : > { %p236_p11 = pnand %p532_p1, %p235_p2 }
  0x25   : > { %s873_s25 = sand.u32 (!%p236_p11), 1, %s739_s16  }
  0x26   : > { %239 = sbr.rel (%p236_p11) target bundleno = 211 (0xd3), region = 32  ;;  %s533_s5 = sshll.u32 (!%p236_p11), %s873_s25, 3 }
  0x27   : > { %s242_s6 = scalar_lea.sflag (!%p236_p11), [#allocation3], %s873_s25  ;;  %s245_s7 = scalar_lea.vmem (!%p236_p11), [#allocation2], %s533_s5 }
  0x2b   : > { %722 = dma.done.wait (%p834_p8), %s242_s6, 128  }
  0x2c   : > { %724 = vsyncadd (%p834_p8), %s242_s6, 4294967168  ;;  %s534_s8 = sshll.u32 %s873_s25, 2  ;;  %v758_v0 = vmov 0   ;;  %v759_v1 = vmov 0.0   ;;  %v306_v2 = vld [vmem:[%s978_s2] sm:$0xf]  ;;  %v307_v3 = vlaneseq }
  0x2d   : > { %615 = vset.pattern.permute.xlu0 %v758_v0  ;;  %s882_s9 = scalar_lea.vmem [#allocation5], %s534_s8  ;;  %s885_s10 = scalar_lea.vmem [#allocation6], %s534_s8  ;;  %v303_v11 = vld [vmem:[%s245_s7] sm:$0xff] }
  0x2e   : > { %301 = vst [vmem:[%s882_s9] sm:$0xf] %v759_v1  ;;  %302 = vst [vmem:[%s885_s10] sm:$0xf] %v759_v1  ;;  %324 = vperm.xlu0 %615, %v306_v2   ;;  %p288_p8 = scmp.lt.s32.totalorder %s747_s18, 1  ;;  %v308_v4 = vshrl.u32 %v307_v3, 7  ;;  %v333_v14 = vcombine.high %v303_v11, %v303_v11  ;;  %s541_s24 = sshll.u32 %s747_s18, 6 }
  0x2f   : > { %s374_s26 = sshll.u32 %s882_s9, 4  ;;  %s904_s7 = scalar_lea.hbm %s979_s3, %s541_s24  ;;  %s906_s26 = int_to_ptr.vmem [resolvable:$true] %s374_s26 }
  0x30   : > { %s289_s27 = scalar_select %p288_p8, %s747_s18, 1  ;;  %v309_v6 = vsub.s32 0, %v308_v4  ;;  %v313_v7 = vsub.s32 4, %v308_v4 }
  0x31   : > { %s389_s8 = sshll.u32 %s885_s10, 4  ;;  %s354_s11 = scalar_lea.sflag [#allocation4], %s873_s25  ;;  %s390_s8 = int_to_ptr.vmem [resolvable:$true] %s389_s8 }
  0x32   : > { %s536_s13 = sshll.u32 %s289_s27, 1  ;;  %s645_s12 = scalar_lea.vmem %s906_s26, 64 }
  0x33   : > { %s294_s22 = scalar_lea.vmem %s977_s1, %s536_s13  ;;  %p646_p11 = scmp.ne.s32.totalorder %s906_s26, %s645_s12 }
  0x34   : > { %v304_v5 = vld [vmem:[%s294_s22] sm:$0x3]  ;;  %s760_s27 = smov [#allocation5]  }
  0x35   : > { %v305_v8 = vunpack.c.0.s8 %v304_v5  ;;  %v337_v16 = vld [vmem:[%s882_s9] sm:$0xf]  ;;  %v341_v26 = vld [vmem:[%s885_s10] sm:$0xf]  ;;  %p647_p12 = pnand %p646_p11, %p838_p9  ;;  %s649_s13 = sshll.u32 %s760_s27, 4  ;;  %s650_s13 = int_to_ptr.vmem [resolvable:$false] %s649_s13 }
  0x36   : > { %s651_s14 = scalar_lea.vmem %s650_s13, 128  ;;  %p652_p1 = scmp.lt.s32.totalorder %s906_s26, %s650_s13 }
  0x37   : > { %v310_v9 = vrot.slane %v305_v8, %v309_v6  ;;  %v314_v10 = vrot.slane %v305_v8, %v313_v7  ;;  %p648_p0 = pneg %p647_p12  ;;  %p653_p2 = scmp.lt.s32.totalorder %s651_s14, %s645_s12 }
  0x39   : > { %v318_v12 = vrot.slane %v310_v9, %v309_v6  ;;  %v322_v13 = vrot.slane %v314_v10, %v309_v6  ;;  %p654_p3 = por %p653_p2, %p652_p1 }
  0x3b   : > { %p655_p5 = pnand %p654_p3, %p648_p0 }
  0xa9   : > { %v325_v15 = vpop.permute.xlu0 %324 }
  0xaa   : > { %vm326_vm0 = vcmp.eq.s32.totalorder %v318_v12, %v325_v15  ;;  %vm327_vm1 = vcmp.eq.s32.totalorder %v322_v13, %v325_v15 }
  0xab   : > { %v537_v17 = vsel %vm326_vm0, 1.0, %v759_v1  ;;  %v538_v18 = vsel %vm327_vm1, 1.0, %v759_v1  ;;  %v335_v19 = vsel %vm326_vm0, %v303_v11, 0.0  ;;  %v336_v20 = vsel %vm327_vm1, %v333_v14, 0.0 }
  0xac   : > { %v338_v21 = vadd.f32 %v336_v20, %v335_v19  ;;  %v344_v22 = vcombine.low %v537_v17, %v538_v18 }
  0xae   : > { %v339_v23 = vadd.f32 %v338_v21, %v337_v16  ;;  %v346_v24 = vadd.f32 %v344_v22, %v303_v11 }
  0xb0   : > { %v348_v25 = vrot.slane %v346_v24, 4  ;;  %340 = vst [vmem:[%s882_s9] sm:$0xf] %v339_v23 }
  0xb1   : > { %658 = shalt.err (!%p655_p5)
}
  0xb2   : > { %s659_s9 = scalar_lea.hbm %s904_s7, 64  ;;  %s663_s5 = scalar_lea.hbm %s979_s3, 128 }
  0xb3   : > { %p660_p6 = scmp.ne.s32.totalorder %s904_s7, %s659_s9  ;;  %p664_p4 = scmp.lt.s32.totalorder %s904_s7, %s979_s3 }
  0xb4   : > { %p665_p13 = scmp.lt.s32.totalorder %s663_s5, %s659_s9 }
  0xb5   : > { %p661_p7 = pnand %p660_p6, %p838_p9 }
  0xb6   : > { %p666_p8 = por %p665_p13, %p664_p4 }
  0xb7   : > { %p662_p10 = pneg %p661_p7 }
  0xb9   : > { %p667_p11 = pnand %p666_p8, %p662_p10 }
  0xbb   : > { %670 = shalt.err (!%p667_p11)
}
  0xbc   : > { %548 = dma.vmem_to_hbm [thread:$0]  (%p838_p9), %s906_s26, 64, %s904_s7, %s354_s11   ;;  %v350_v27 = vadd.f32 %v348_v25, %v346_v24 }
  0xbd   : > { %s387_s14 = scalar_lea.hbm %s980_s4, %s541_s24  ;;  %s359_s9 = scalar_lea.sflag [#allocation7], %s873_s25 }
  0xbe   : > { %v351_v28 = vadd.f32 %v350_v27, %v341_v26  ;;  %s671_s21 = scalar_lea.vmem %s390_s8, 64  ;;  %s761_s22 = smov [#allocation6]  }
  0xbf   : > { %p672_p12 = scmp.ne.s32.totalorder %s390_s8, %s671_s21  ;;  %s675_s5 = sshll.u32 %s761_s22, 4  ;;  %s676_s5 = int_to_ptr.vmem [resolvable:$false] %s675_s5 }
  0xc0   : > { %352 = vst [vmem:[%s885_s10] sm:$0xf] %v351_v28  ;;  %s677_s26 = scalar_lea.vmem %s676_s5, 128  ;;  %p678_p2 = scmp.lt.s32.totalorder %s390_s8, %s676_s5 }
  0xc1   : > { %p673_p0 = pnand %p672_p12, %p838_p9  ;;  %p679_p3 = scmp.lt.s32.totalorder %s677_s26, %s671_s21 }
  0xc3   : > { %p674_p1 = pneg %p673_p0  ;;  %p680_p5 = por %p679_p3, %p678_p2 }
  0xc5   : > { %p681_p6 = pnand %p680_p5, %p674_p1 }
  0xc7   : > { %684 = shalt.err (!%p681_p6)
}
  0xc8   : > { %s685_s18 = scalar_lea.hbm %s387_s14, 64  ;;  %s689_s24 = scalar_lea.hbm %s980_s4, 128 }
  0xc9   : > { %p686_p7 = scmp.ne.s32.totalorder %s387_s14, %s685_s18  ;;  %p690_p13 = scmp.lt.s32.totalorder %s387_s14, %s980_s4 }
  0xca   : > { %p691_p8 = scmp.lt.s32.totalorder %s689_s24, %s685_s18 }
  0xcb   : > { %p687_p10 = pnand %p686_p7, %p838_p9 }
  0xcc   : > { %p692_p11 = por %p691_p8, %p690_p13 }
  0xcd   : > { %p688_p4 = pneg %p687_p10 }
  0xcf   : > { %p693_p12 = pnand %p692_p11, %p688_p4 }
  0xd1   : > { %696 = shalt.err (!%p693_p12)
}
  0xd2   : > { %549 = dma.vmem_to_hbm [thread:$0]  (%p838_p9), %s390_s8, 64, %s387_s14, %s359_s9  }
  0xd3 PF: > { %s401_s6 = sand.u32 1, %s735_s15   ;;  %p986_p0 = scmp.ne.s32.totalorder %s984_s30, 0 }
  0xd4   : > { %p987_p1 = scmp.ge.s32.totalorder %s755_s20, 2  ;;  %s402_s27 = scalar_lea.sflag [#allocation4], %s401_s6 }
  0xd6   : > { %p557_p2 = pnand %p987_p1, %p986_p0 }
  0xd8   : > { %p558_p3 = pneg %p557_p2 }
  0xda   : > { %726 = dma.done.wait (%p558_p3), %s402_s27, 64  }
  0xdb   : > { %728 = vsyncadd (%p558_p3), %s402_s27, 4294967232  ;;  %s411_s12 = scalar_lea.sflag [#allocation7], %s401_s6 }
  0xdc   : > { %730 = dma.done.wait (%p558_p3), %s411_s12, 64  }
  0xdd   : > { %732 = vsyncadd (%p558_p3), %s411_s12, 4294967232  ;;  %s24_s20 = sadd.s32 1, %s755_s20   ;;  %s988_s15 = smov %s739_s16 }
  0xde   : > { %p21_p5 = scmp.ge.s32.totalorder %s24_s20, 4   ;;  %s989_s16 = smov %s743_s17 }
  0xdf   : > { %s990_s17 = smov %s843_s29  ;;  %s991_s18 = smov %s751_s19 }
  0xe0   : > { %s992_s19 = smov %s994_s23  ;;  %23 = sbr.rel (!%p21_p5) target bundleno = 8 (0x8), region = 101 }
  0xe5   :  { %416 = vsyncpa [#allocation3], 1 }
  0xe6   :  { %418 = vsyncpa [#allocation3 + $0x1], 1 }
  0xe7   :  { %419 = vsyncpa [#allocation4], 1 }
  0xe8   :  { %421 = vsyncpa [#allocation4 + $0x1], 1 }
  0xe9   :  { %422 = vsyncpa [#allocation7], 1 }
  0xea   :  { %424 = vsyncpa [#allocation7 + $0x1], 1 }

</bundles_post_ra>
